<compile_context>
chip_gen: v7x
topology: tpu7x:2x2x1
jax: 0.10.0
libtpu: 0.0.40
codegen_flags: <defaults>
</compile_context>

<pallas_src>
import functools

import jax
import jax.numpy as jnp
from jax import lax
from jax.experimental import pallas as pl
from jax.experimental.pallas import tpu as pltpu


# ---------------------------------------------------------------------------
# in-kernel helpers
# ---------------------------------------------------------------------------

def _segment_embedding(seg_ids, seg_tab):
    """seg_ids: (TN,1) int32 in {0,1,2}; seg_tab: (8,D) f32 (rows 3..7 are zero pad).
    Three masked multiply-adds on the VPU (no MXU)."""
    return ((seg_ids == 0).astype(jnp.float32) * seg_tab[0:1, :]
            + (seg_ids == 1).astype(jnp.float32) * seg_tab[1:2, :]
            + (seg_ids == 2).astype(jnp.float32) * seg_tab[2:3, :])


def _pe_rows(pe_ref, tile, tn, s_blocks):
    """Slice the TN positional-encoding rows for this tile out of the VMEM-resident
    (S, D) table.  tn divides S, so the rows are contiguous."""
    if s_blocks == 1:
        return pe_ref[...].astype(jnp.float32)
    pos_off = (tile % s_blocks) * tn          # multiple of tn (>= 8) at runtime
    return pe_ref[pl.ds(pos_off, tn), :].astype(jnp.float32)


def _keep_mask(shape, base_row, d, p_drop, seed):
    """Bernoulli(1-p) keep mask from a hash of the global element index.
    Pure int32 VPU ops (no pltpu.prng_*), so it also runs in interpret mode, and the
    mask is independent of the tiling.  Keep prob is quantized to multiples of 2^-24.
    # TODO(synk): not bit-identical to torch.nn.Dropout's RNG stream."""
    q = 1.0 - p_drop
    thresh = min(int(round(q * float(1 << 24))), 1 << 24)
    seed_mix = (int(seed) * 0x9E3779B9) & 0xFFFFFFFF
    if seed_mix >= (1 << 31):
        seed_mix -= 1 << 32
    c1 = 0x7FEB352D
    c2 = 0x846CA68B - (1 << 32)
    rows = lax.broadcasted_iota(jnp.int32, shape, 0)
    cols = lax.broadcasted_iota(jnp.int32, shape, 1)
    h = (base_row + rows) * jnp.int32(d) + cols + jnp.int32(seed_mix)
    h = h ^ lax.shift_right_logical(h, jnp.int32(16))
    h = h * jnp.int32(c1)
    h = h ^ lax.shift_right_logical(h, jnp.int32(15))
    h = h * jnp.int32(c2)
    h = h ^ lax.shift_right_logical(h, jnp.int32(16))
    return lax.shift_right_logical(h, jnp.int32(8)) < jnp.int32(thresh)


# ---------------------------------------------------------------------------
# kernel
# ---------------------------------------------------------------------------

def _bert_embed_kernel(ids_ref,       # SMEM (N,) int32 token ids (scalar prefetch)
                       seg_ref,       # VMEM (TN, 1) int32 segment ids for this tile
                       seg_tab_ref,   # VMEM (8, D) segment table (rows 3..7 zero pad)
                       pe_ref,        # VMEM (S, D) positional table (resident, one fetch)
                       tok_tab_ref,   # vocab table: VMEM (V, D) block OR HBM ref (pl.ANY)
                       out_ref,       # VMEM (TN, D) output tile
                       tok_rows_ref,  # VMEM (TN, D) scratch: gathered token rows
                       copy_sem,      # DMA semaphore (1,) -- HBM path only
                       *, tn, d, s_blocks, vocab, p_drop, training, seed,
                       table_in_vmem):
    tile = pl.program_id(0)
    base = tile * tn

    # ---- 1) token-row gather ------------------------------------------------
    # Out-of-range ids are clamped (nn.Embedding would raise).
    def _gather_row(r, carry):
        tok_id = jnp.clip(ids_ref[base + r], 0, vocab - 1)
        if table_in_vmem:
            # small-vocab fast path: dynamic VMEM load, no DMA descriptors at all
            tok_rows_ref[pl.ds(r, 1), :] = tok_tab_ref[pl.ds(tok_id, 1), :]
        else:
            # large-vocab path: one row-sized DMA from the HBM-resident table
            pltpu.make_async_copy(
                tok_tab_ref.at[pl.ds(tok_id, 1), :],
                tok_rows_ref.at[pl.ds(r, 1), :],
                copy_sem.at[0],
            ).start()
        return carry

    # unroll=8 lets scalar id reads / clips co-issue with the previous row's copy.
    lax.fori_loop(0, tn, _gather_row, None, unroll=8)

    # ---- 2) VPU work that does not need the token rows -----------------------
    # (on the HBM path this overlaps the in-flight gather DMAs)
    rest = (_segment_embedding(seg_ref[...], seg_tab_ref[...].astype(jnp.float32))
            + _pe_rows(pe_ref, tile, tn, s_blocks))
    if training and p_drop > 0.0:
        keep = _keep_mask((tn, d), base, d, p_drop, seed)

    # ---- 3) drain the gather (HBM path): one aggregated byte-count wait -------
    if not table_in_vmem:
        # The DMA semaphore accumulates bytes, so a single descriptor covering all
        # TN rows replaces TN per-row waits.
        pltpu.make_async_copy(
            tok_tab_ref.at[pl.ds(0, tn), :], tok_rows_ref, copy_sem.at[0],
        ).wait()
        # TODO(synk): chunk the gather (64-128 rows per sem slot) to pipeline DMA
        #             latency against the VPU adds for very large row tiles.

    x = tok_rows_ref[...].astype(jnp.float32) + rest
    if training and p_drop > 0.0:
        x = jnp.where(keep, x * (1.0 / (1.0 - p_drop)), 0.0)
    out_ref[...] = x.astype(out_ref.dtype)


# ---------------------------------------------------------------------------
# wrapper
# ---------------------------------------------------------------------------

def bert_embedding(sequence, segment_label, tok_table, seg_table, pe_table,
                   *, p_drop=0.1, training=False, seed=0, row_tile=None,
                   out_dtype=jnp.float32, vocab_in_vmem=None):
    """sequence, segment_label: [B, S] int (B == S required by the module's broadcast).
    Returns [B, S, D] in `out_dtype`.  seq_len must be a multiple of 8.
    Pass a bf16 `tok_table` and/or out_dtype=jnp.bfloat16 to halve gather/store HBM
    bytes (compute stays f32)."""
    B, S = sequence.shape
    assert B == S, ("PyTorch module's broadcast ([1,B,D] + [B,S,D]) only type-checks "
                    "when batch == seq_len; reproduced faithfully.")
    V, D = tok_table.shape
    N = B * S

    # Row tile: largest multiple of 8 that divides S, capped at 1024 rows.
    if row_tile is None:
        TN = 8
        for cand in range(8, min(S, 1024) + 1, 8):
            if S % cand == 0:
                TN = cand
    else:
        TN = row_tile
    assert S % TN == 0 and TN % 8 == 0, "row tile must be a multiple of 8 dividing seq_len"
    s_blocks = S // TN
    # grid = B * s_blocks steps; keep it >= 2 (ideally even) so both TensorCores on
    # v7x get balanced work under dimension_semantics=("parallel",).

    ids_flat = sequence.reshape(N).astype(jnp.int32)           # -> SMEM (scalar prefetch)
    seg2d = segment_label.reshape(N, 1).astype(jnp.int32)
    pe = pe_table[:S]                                          # (S, D), VMEM resident
    seg_tab_pad = jnp.zeros((8, D), seg_table.dtype).at[:3].set(seg_table)

    tok_itemsize = jnp.dtype(tok_table.dtype).itemsize
    out_itemsize = jnp.dtype(out_dtype).itemsize
    pe_itemsize = jnp.dtype(pe.dtype).itemsize
    seg_itemsize = jnp.dtype(seg_tab_pad.dtype).itemsize

    if vocab_in_vmem is None:
        vocab_in_vmem = (V * D * tok_itemsize) <= (2 << 20)    # fast path for small vocabs
    if not vocab_in_vmem:
        assert V >= TN, "aggregated gather wait assumes vocab_size >= row tile"

    # VMEM budget.  NB: a (TN, 1) int32 block is lane-padded to (TN, 128).
    vmem_need = (2 * TN * 128 * 4                  # segment-id tile (double buffered)
                 + 2 * 8 * D * seg_itemsize        # segment table (resident)
                 + 2 * S * D * pe_itemsize         # positional table (resident)
                 + 2 * TN * D * out_itemsize       # output tile
                 + TN * D * tok_itemsize)          # gathered-token-row scratch
    if vocab_in_vmem:
        vmem_need += 2 * V * D * tok_itemsize      # resident vocab table
    # 2x headroom, >= 4 MiB, capped at 48 MiB (headroom inside v7x's 64 MiB per TC).
    vmem_limit = int(min(max(2 * vmem_need, 4 << 20), 48 << 20))

    kernel = functools.partial(
        _bert_embed_kernel, tn=TN, d=D, s_blocks=s_blocks, vocab=V,
        p_drop=float(p_drop), training=bool(training), seed=int(seed),
        table_in_vmem=bool(vocab_in_vmem))

    tok_spec = (pl.BlockSpec((V, D), lambda i, ids: (0, 0)) if vocab_in_vmem
                else pl.BlockSpec(memory_space=pl.ANY))

    out = pl.pallas_call(
        kernel,
        out_shape=jax.ShapeDtypeStruct((N, D), out_dtype),
        grid_spec=pltpu.PrefetchScalarGridSpec(
            num_scalar_prefetch=1,                               # token ids -> SMEM
            grid=(N // TN,),
            in_specs=[
                pl.BlockSpec((TN, 1), lambda i, ids: (i, 0)),    # segment ids tile
                pl.BlockSpec((8, D), lambda i, ids: (0, 0)),     # segment table (resident)
                pl.BlockSpec((S, D), lambda i, ids: (0, 0)),     # positional table (resident)
                tok_spec,                                        # vocab table (VMEM or HBM)
            ],
            out_specs=pl.BlockSpec((TN, D), lambda i, ids: (i, 0)),
            scratch_shapes=[
                pltpu.VMEM((TN, D), tok_table.dtype),            # gathered token rows
                pltpu.SemaphoreType.DMA((1,)),                   # gather completion sem
            ],
        ),
        compiler_params=pltpu.CompilerParams(
            dimension_semantics=("parallel",),
            vmem_limit_bytes=vmem_limit,
        ),
    )(ids_flat, seg2d, seg_tab_pad, pe, tok_table)

    return out.reshape(B, S, D)


def make_positional_table(seq_len, d_model):
    # Same buffer as PositionalEmbedding.__init__ (rows 0..seq_len-1).
    pos = jnp.arange(seq_len, dtype=jnp.float32)[:, None]
    div = 1.0 / jnp.power(10000.0, jnp.arange(0, d_model, 2, dtype=jnp.float32) / d_model)
    ang = pos * div                                        # (S, D//2)
    pe = jnp.zeros((seq_len, d_model), jnp.float32)
    pe = pe.at[:, 0::2].set(jnp.sin(ang))
    pe = pe.at[:, 1::2].set(jnp.cos(ang))
    return pe


if __name__ == "__main__":
    # Small shapes: vocab=64, d_model=128 (lane-dense), batch=seq=8 (B must equal S, see note).
    V, D, B, S = 64, 128, 8, 8

    root = jax.random.PRNGKey(0)
    k_tok_tab, k_seg_tab, k_seq, k_seg = jax.random.split(root, 4)

    tok_table = jax.random.normal(k_tok_tab, (V, D), jnp.float32)      # nn.Embedding ~ N(0,1)
    seg_table = jax.random.normal(k_seg_tab, (3, D), jnp.float32)
    pe_table = make_positional_table(S, D)

    sequence = jax.random.randint(k_seq, (B, S), 0, V, dtype=jnp.int32)
    segment_label = jax.random.randint(k_seg, (B, S), 0, 3, dtype=jnp.int32)

    # Pure-JAX reference of the PyTorch forward (eval mode).
    ref = tok_table[sequence] + pe_table[None, :, :] + seg_table[segment_label]

    # 1) Eval mode, small-vocab fast path (vocab table VMEM-resident): must match exactly.
    out = jax.block_until_ready(
        bert_embedding(sequence, segment_label, tok_table, seg_table, pe_table,
                       p_drop=0.1, training=False))
    assert out.shape == (B, S, D)
    assert jnp.allclose(out, ref, atol=1e-5, rtol=1e-5)

    # 2) Eval mode, forced large-vocab path (HBM table, per-row DMA gather + aggregated wait).
    out_hbm = jax.block_until_ready(
        bert_embedding(sequence, segment_label, tok_table, seg_table, pe_table,
                       p_drop=0.1, training=False, vocab_in_vmem=False))
    assert jnp.allclose(out_hbm, ref, atol=1e-5, rtol=1e-5)

    # 3) Training mode: every element is either dropped (0) or scaled by 1/(1-p).
    p = 0.1
    out_tr = jax.block_until_ready(
        bert_embedding(sequence, segment_label, tok_table, seg_table, pe_table,
                       p_drop=p, training=True, seed=1234))
    scaled = ref / (1.0 - p)
    is_zero = jnp.isclose(out_tr, 0.0, atol=1e-6)
    ok = is_zero | jnp.isclose(out_tr, scaled, atol=1e-4, rtol=1e-4)
    assert out_tr.shape == (B, S, D)
    assert bool(jnp.all(ok))
    drop_frac = float(jnp.mean(is_zero.astype(jnp.float32)))
    assert 0.01 < drop_frac < 0.4, f"dropout mask degenerate: drop_frac={drop_frac}"

    print("KERNEL_OK")
</pallas_src>

<mosaic_0001>
module attributes {stable_mosaic.version = 11 : i64} {
  func.func @_bert_embed_kernel(%arg0: i32, %arg1: memref<64xi32, #tpu.memory_space<smem>>, %arg2: memref<8x1xi32, #tpu.memory_space<vmem>>, %arg3: memref<8x128xf32, #tpu.memory_space<vmem>>, %arg4: memref<8x128xf32, #tpu.memory_space<vmem>>, %arg5: memref<64x128xf32, #tpu.memory_space<vmem>>, %arg6: memref<8x128xf32, #tpu.memory_space<vmem>>, %arg7: memref<8x128xf32, #tpu.memory_space<vmem>>, %arg8: memref<1x!tpu.dma_semaphore, #tpu.memory_space<semaphore_mem>>) attributes {dimension_semantics = [#tpu.dimension_semantics<parallel>], iteration_bounds = array<i64: 8>, scalar_prefetch = 1 : i64, scratch_operands = 2 : i64, tpu.core_type = #tpu.core_type<tc>, window_params = [{transform_indices = @transform_0, window_bounds = array<i64: 8, 1>}, {pipeline_mode = #tpu.pipeline_mode<synchronous>, transform_indices = @transform_1, window_bounds = array<i64: 8, 128>}, {pipeline_mode = #tpu.pipeline_mode<synchronous>, transform_indices = @transform_2, window_bounds = array<i64: 8, 128>}, {pipeline_mode = #tpu.pipeline_mode<synchronous>, transform_indices = @transform_3, window_bounds = array<i64: 64, 128>}, {transform_indices = @transform_4, window_bounds = array<i64: 8, 128>}]} {
    %c8_i32 = arith.constant 8 : i32
    %0 = arith.muli %arg0, %c8_i32 : i32
    %c0_i32 = arith.constant 0 : i32
    %1 = arith.addi %0, %c0_i32 : i32
    %2 = arith.index_cast %1 : i32 to index
    %3 = memref.load %arg1[%2] : memref<64xi32, #tpu.memory_space<smem>>
    %c0_i32_0 = arith.constant 0 : i32
    %c63_i32 = arith.constant 63 : i32
    %4 = arith.maxsi %c0_i32_0, %3 : i32
    %5 = arith.minsi %c63_i32, %4 : i32
    %6 = arith.index_cast %5 : i32 to index
    %c0 = arith.constant 0 : index
    %7 = vector.load %arg5[%6, %c0] : memref<64x128xf32, #tpu.memory_space<vmem>>, vector<1x128xf32>
    %8 = arith.index_cast %c0_i32 : i32 to index
    %c0_1 = arith.constant 0 : index
    %9 = vector.load %arg7[%8, %c0_1] : memref<8x128xf32, #tpu.memory_space<vmem>>, vector<1x128xf32>
    tpu.vector_store %arg7[%8, %c0_1], %7 {strides = array<i32>} : memref<8x128xf32, #tpu.memory_space<vmem>>, vector<1x128xf32>,
    %c1_i32 = arith.constant 1 : i32
    %10 = arith.addi %0, %c1_i32 : i32
    %11 = arith.index_cast %10 : i32 to index
    %12 = memref.load %arg1[%11] : memref<64xi32, #tpu.memory_space<smem>>
    %c0_i32_2 = arith.constant 0 : i32
    %c63_i32_3 = arith.constant 63 : i32
    %13 = arith.maxsi %c0_i32_2, %12 : i32
    %14 = arith.minsi %c63_i32_3, %13 : i32
    %15 = arith.index_cast %14 : i32 to index
    %c0_4 = arith.constant 0 : index
    %16 = vector.load %arg5[%15, %c0_4] : memref<64x128xf32, #tpu.memory_space<vmem>>, vector<1x128xf32>
    %17 = arith.index_cast %c1_i32 : i32 to index
    %c0_5 = arith.constant 0 : index
    %18 = vector.load %arg7[%17, %c0_5] : memref<8x128xf32, #tpu.memory_space<vmem>>, vector<1x128xf32>
    tpu.vector_store %arg7[%17, %c0_5], %16 {strides = array<i32>} : memref<8x128xf32, #tpu.memory_space<vmem>>, vector<1x128xf32>,
    %c2_i32 = arith.constant 2 : i32
    %19 = arith.addi %0, %c2_i32 : i32
    %20 = arith.index_cast %19 : i32 to index
    %21 = memref.load %arg1[%20] : memref<64xi32, #tpu.memory_space<smem>>
    %c0_i32_6 = arith.constant 0 : i32
    %c63_i32_7 = arith.constant 63 : i32
    %22 = arith.maxsi %c0_i32_6, %21 : i32
    %23 = arith.minsi %c63_i32_7, %22 : i32
    %24 = arith.index_cast %23 : i32 to index
    %c0_8 = arith.constant 0 : index
    %25 = vector.load %arg5[%24, %c0_8] : memref<64x128xf32, #tpu.memory_space<vmem>>, vector<1x128xf32>
    %26 = arith.index_cast %c2_i32 : i32 to index
    %c0_9 = arith.constant 0 : index
    %27 = vector.load %arg7[%26, %c0_9] : memref<8x128xf32, #tpu.memory_space<vmem>>, vector<1x128xf32>
    tpu.vector_store %arg7[%26, %c0_9], %25 {strides = array<i32>} : memref<8x128xf32, #tpu.memory_space<vmem>>, vector<1x128xf32>,
    %c3_i32 = arith.constant 3 : i32
    %28 = arith.addi %0, %c3_i32 : i32
    %29 = arith.index_cast %28 : i32 to index
    %30 = memref.load %arg1[%29] : memref<64xi32, #tpu.memory_space<smem>>
    %c0_i32_10 = arith.constant 0 : i32
    %c63_i32_11 = arith.constant 63 : i32
    %31 = arith.maxsi %c0_i32_10, %30 : i32
    %32 = arith.minsi %c63_i32_11, %31 : i32
    %33 = arith.index_cast %32 : i32 to index
    %c0_12 = arith.constant 0 : index
    %34 = vector.load %arg5[%33, %c0_12] : memref<64x128xf32, #tpu.memory_space<vmem>>, vector<1x128xf32>
    %35 = arith.index_cast %c3_i32 : i32 to index
    %c0_13 = arith.constant 0 : index
    %36 = vector.load %arg7[%35, %c0_13] : memref<8x128xf32, #tpu.memory_space<vmem>>, vector<1x128xf32>
    tpu.vector_store %arg7[%35, %c0_13], %34 {strides = array<i32>} : memref<8x128xf32, #tpu.memory_space<vmem>>, vector<1x128xf32>,
    %c4_i32 = arith.constant 4 : i32
    %37 = arith.addi %0, %c4_i32 : i32
    %38 = arith.index_cast %37 : i32 to index
    %39 = memref.load %arg1[%38] : memref<64xi32, #tpu.memory_space<smem>>
    %c0_i32_14 = arith.constant 0 : i32
    %c63_i32_15 = arith.constant 63 : i32
    %40 = arith.maxsi %c0_i32_14, %39 : i32
    %41 = arith.minsi %c63_i32_15, %40 : i32
    %42 = arith.index_cast %41 : i32 to index
    %c0_16 = arith.constant 0 : index
    %43 = vector.load %arg5[%42, %c0_16] : memref<64x128xf32, #tpu.memory_space<vmem>>, vector<1x128xf32>
    %44 = arith.index_cast %c4_i32 : i32 to index
    %c0_17 = arith.constant 0 : index
    %45 = vector.load %arg7[%44, %c0_17] : memref<8x128xf32, #tpu.memory_space<vmem>>, vector<1x128xf32>
    tpu.vector_store %arg7[%44, %c0_17], %43 {strides = array<i32>} : memref<8x128xf32, #tpu.memory_space<vmem>>, vector<1x128xf32>,
    %c5_i32 = arith.constant 5 : i32
    %46 = arith.addi %0, %c5_i32 : i32
    %47 = arith.index_cast %46 : i32 to index
    %48 = memref.load %arg1[%47] : memref<64xi32, #tpu.memory_space<smem>>
    %c0_i32_18 = arith.constant 0 : i32
    %c63_i32_19 = arith.constant 63 : i32
    %49 = arith.maxsi %c0_i32_18, %48 : i32
    %50 = arith.minsi %c63_i32_19, %49 : i32
    %51 = arith.index_cast %50 : i32 to index
    %c0_20 = arith.constant 0 : index
    %52 = vector.load %arg5[%51, %c0_20] : memref<64x128xf32, #tpu.memory_space<vmem>>, vector<1x128xf32>
    %53 = arith.index_cast %c5_i32 : i32 to index
    %c0_21 = arith.constant 0 : index
    %54 = vector.load %arg7[%53, %c0_21] : memref<8x128xf32, #tpu.memory_space<vmem>>, vector<1x128xf32>
    tpu.vector_store %arg7[%53, %c0_21], %52 {strides = array<i32>} : memref<8x128xf32, #tpu.memory_space<vmem>>, vector<1x128xf32>,
    %c6_i32 = arith.constant 6 : i32
    %55 = arith.addi %0, %c6_i32 : i32
    %56 = arith.index_cast %55 : i32 to index
    %57 = memref.load %arg1[%56] : memref<64xi32, #tpu.memory_space<smem>>
    %c0_i32_22 = arith.constant 0 : i32
    %c63_i32_23 = arith.constant 63 : i32
    %58 = arith.maxsi %c0_i32_22, %57 : i32
    %59 = arith.minsi %c63_i32_23, %58 : i32
    %60 = arith.index_cast %59 : i32 to index
    %c0_24 = arith.constant 0 : index
    %61 = vector.load %arg5[%60, %c0_24] : memref<64x128xf32, #tpu.memory_space<vmem>>, vector<1x128xf32>
    %62 = arith.index_cast %c6_i32 : i32 to index
    %c0_25 = arith.constant 0 : index
    %63 = vector.load %arg7[%62, %c0_25] : memref<8x128xf32, #tpu.memory_space<vmem>>, vector<1x128xf32>
    tpu.vector_store %arg7[%62, %c0_25], %61 {strides = array<i32>} : memref<8x128xf32, #tpu.memory_space<vmem>>, vector<1x128xf32>,
    %c7_i32 = arith.constant 7 : i32
    %64 = arith.addi %0, %c7_i32 : i32
    %65 = arith.index_cast %64 : i32 to index
    %66 = memref.load %arg1[%65] : memref<64xi32, #tpu.memory_space<smem>>
    %c0_i32_26 = arith.constant 0 : i32
    %c63_i32_27 = arith.constant 63 : i32
    %67 = arith.maxsi %c0_i32_26, %66 : i32
    %68 = arith.minsi %c63_i32_27, %67 : i32
    %69 = arith.index_cast %68 : i32 to index
    %c0_28 = arith.constant 0 : index
    %70 = vector.load %arg5[%69, %c0_28] : memref<64x128xf32, #tpu.memory_space<vmem>>, vector<1x128xf32>
    %71 = arith.index_cast %c7_i32 : i32 to index
    %c0_29 = arith.constant 0 : index
    %72 = vector.load %arg7[%71, %c0_29] : memref<8x128xf32, #tpu.memory_space<vmem>>, vector<1x128xf32>
    tpu.vector_store %arg7[%71, %c0_29], %70 {strides = array<i32>} : memref<8x128xf32, #tpu.memory_space<vmem>>, vector<1x128xf32>,
    %c8_i32_30 = arith.constant 8 : i32
    %c0_31 = arith.constant 0 : index
    %c0_32 = arith.constant 0 : index
    %73 = vector.load %arg2[%c0_31, %c0_32] : memref<8x1xi32, #tpu.memory_space<vmem>>, vector<8x1xi32>
    %c0_33 = arith.constant 0 : index
    %c0_34 = arith.constant 0 : index
    %74 = vector.load %arg3[%c0_33, %c0_34] : memref<8x128xf32, #tpu.memory_space<vmem>>, vector<8x128xf32>
    %c0_i32_35 = arith.constant 0 : i32
    %75 = vector.broadcast %c0_i32_35 : i32 to vector<8x1xi32>
    %76 = arith.cmpi eq, %73, %75 : vector<8x1xi32>
    %77 = arith.extui %76 : vector<8x1xi1> to vector<8x1xi32>
    %78 = arith.sitofp %77 : vector<8x1xi32> to vector<8x1xf32>
    %79 = vector.extract_strided_slice %74 {offsets = [0, 0], sizes = [1, 128], strides = [1, 1]} : vector<8x128xf32> to vector<1x128xf32>
    %80 = vector.broadcast %78 : vector<8x1xf32> to vector<8x128xf32>
    %81 = vector.broadcast %79 : vector<1x128xf32> to vector<8x128xf32>
    %82 = arith.mulf %80, %81 : vector<8x128xf32>
    %c1_i32_36 = arith.constant 1 : i32
    %83 = vector.broadcast %c1_i32_36 : i32 to vector<8x1xi32>
    %84 = arith.cmpi eq, %73, %83 : vector<8x1xi32>
    %85 = arith.extui %84 : vector<8x1xi1> to vector<8x1xi32>
    %86 = arith.sitofp %85 : vector<8x1xi32> to vector<8x1xf32>
    %87 = vector.extract_strided_slice %74 {offsets = [1, 0], sizes = [1, 128], strides = [1, 1]} : vector<8x128xf32> to vector<1x128xf32>
    %88 = vector.broadcast %86 : vector<8x1xf32> to vector<8x128xf32>
    %89 = vector.broadcast %87 : vector<1x128xf32> to vector<8x128xf32>
    %90 = arith.mulf %88, %89 : vector<8x128xf32>
    %91 = arith.addf %82, %90 : vector<8x128xf32>
    %c2_i32_37 = arith.constant 2 : i32
    %92 = vector.broadcast %c2_i32_37 : i32 to vector<8x1xi32>
    %93 = arith.cmpi eq, %73, %92 : vector<8x1xi32>
    %94 = arith.extui %93 : vector<8x1xi1> to vector<8x1xi32>
    %95 = arith.sitofp %94 : vector<8x1xi32> to vector<8x1xf32>
    %96 = vector.extract_strided_slice %74 {offsets = [2, 0], sizes = [1, 128], strides = [1, 1]} : vector<8x128xf32> to vector<1x128xf32>
    %97 = vector.broadcast %95 : vector<8x1xf32> to vector<8x128xf32>
    %98 = vector.broadcast %96 : vector<1x128xf32> to vector<8x128xf32>
    %99 = arith.mulf %97, %98 : vector<8x128xf32>
    %100 = arith.addf %91, %99 : vector<8x128xf32>
    %c0_38 = arith.constant 0 : index
    %c0_39 = arith.constant 0 : index
    %101 = vector.load %arg4[%c0_38, %c0_39] : memref<8x128xf32, #tpu.memory_space<vmem>>, vector<8x128xf32>
    %102 = arith.addf %100, %101 : vector<8x128xf32>
    %c0_40 = arith.constant 0 : index
    %c0_41 = arith.constant 0 : index
    %103 = vector.load %arg7[%c0_40, %c0_41] : memref<8x128xf32, #tpu.memory_space<vmem>>, vector<8x128xf32>
    %104 = arith.addf %103, %102 : vector<8x128xf32>
    %c0_42 = arith.constant 0 : index
    %c0_43 = arith.constant 0 : index
    %105 = vector.load %arg6[%c0_42, %c0_43] : memref<8x128xf32, #tpu.memory_space<vmem>>, vector<8x128xf32>
    tpu.vector_store %arg6[%c0_42, %c0_43], %104 {strides = array<i32>} : memref<8x128xf32, #tpu.memory_space<vmem>>, vector<8x128xf32>,
    return
  }
  func.func @transform_0(%arg0: i32, %arg1: memref<64xi32, #tpu.memory_space<smem>>) -> (i32, i32) {
    %c0_i32 = arith.constant 0 : i32
    %c0_i32_0 = arith.constant 0 : i32
    return %arg0, %c0_i32 : i32, i32
  }
  func.func @transform_1(%arg0: i32, %arg1: memref<64xi32, #tpu.memory_space<smem>>) -> (i32, i32) {
    %c0_i32 = arith.constant 0 : i32
    %c0_i32_0 = arith.constant 0 : i32
    %c0_i32_1 = arith.constant 0 : i32
    return %c0_i32, %c0_i32_0 : i32, i32
  }
  func.func @transform_2(%arg0: i32, %arg1: memref<64xi32, #tpu.memory_space<smem>>) -> (i32, i32) {
    %c0_i32 = arith.constant 0 : i32
    %c0_i32_0 = arith.constant 0 : i32
    %c0_i32_1 = arith.constant 0 : i32
    return %c0_i32, %c0_i32_0 : i32, i32
  }
  func.func @transform_3(%arg0: i32, %arg1: memref<64xi32, #tpu.memory_space<smem>>) -> (i32, i32) {
    %c0_i32 = arith.constant 0 : i32
    %c0_i32_0 = arith.constant 0 : i32
    %c0_i32_1 = arith.constant 0 : i32
    return %c0_i32, %c0_i32_0 : i32, i32
  }
  func.func @transform_4(%arg0: i32, %arg1: memref<64xi32, #tpu.memory_space<smem>>) -> (i32, i32) {
    %c0_i32 = arith.constant 0 : i32
    %c0_i32_0 = arith.constant 0 : i32
    return %arg0, %c0_i32 : i32, i32
  }
}

</mosaic_0001>

<bundles_post_ra>
// kernel: tpu_custom_call.1
= control target key start
LH: loop header
LB: loop body
LE: loop exit
PB: predicated region body
PF: predicated region fallthrough
CT: control target
= control target key end

     0   :  { %s807_s0 = inlined_call_operand.hbm [shape: s32[64], index: 0, kind: input, shape index: {}]   ;;  %s808_s1 = inlined_call_operand.vmem [shape: s32[64,1], index: 1, kind: input, shape index: {}]   ;;  %s809_s2 = inlined_call_operand.vmem [shape: f32[8,128], index: 2, kind: input, shape index: {}]   ;;  %s810_s3 = inlined_call_operand.vmem [shape: f32[8,128], index: 3, kind: input, shape index: {}]   ;;  %s811_s4 = inlined_call_operand.vmem [shape: f32[64,128], index: 4, kind: input, shape index: {}]   ;;  %s812_s5 = inlined_call_operand.hbm [shape: f32[64,128], index: 5, kind: output, shape index: {}]  }
   0x1   :  { %s524_s20 = scalar_lea.hbm %s807_s0, 16 }
   0x2   :  { %p525_p0 = scmp.ne.s32.totalorder %s807_s0, %s524_s20  ;;  %p528_p1 = scmp.lt.u32.totalorder %s524_s20, %s807_s0 }
   0x4   :  { %p530_p2 = pnand %p528_p1, %p525_p0 }
   0x6   :  { %533 = shalt.err (!%p530_p2)  }
   0x7   :  { %s600_s25 = smov [#allocation5]  }
   0x8   :  { %11 = dma.hbm_to_smem %s807_s0, 16, %s600_s25, [#allocation4] }
   0x9   :  { %578 = dma.done.wait [#allocation4], 16 }
   0xa   :  { %579 = vsyncadd [#allocation4], 4294967280 }
   0xb   :  { %13 = sfence }
   0xc   :  { %14 = vsyncpa [#allocation7], 0 }
   0xd   :  { %16 = vsyncpa [#allocation7 + $0x1], 0  ;;  %s646_s28 = smov 0   ;;  %s648_s29 = smov 0  }
   0xe   :  { %s650_s30 = smov 0   ;;  %s652_s6 = smov 0  }
   0xf LB: > { %s667_s0 = sadd.s32 4294967295, %s598_s6   ;;  %s405_s7 = sadd.s32 4294967294, %s598_s6   ;;  %s598_s6 = sphi %s652_s6, %s818_s6   ;;  %s594_s30 = sphi %s650_s30, %s817_s30   ;;  %s590_s29 = sphi %s648_s29, %s816_s29   ;;  %s586_s28 = sphi %s646_s28, %s815_s28  }
  0x10   : > { %s671_s8 = sadd.s32 1, %s598_s6   ;;  %s118_s9 = sadd.s32 1, %s594_s30 }
  0x11   : > { %s115_s10 = ssub.s32 %s598_s6, %s671_s8  ;;  %p128_p3 = scmp.ne.s32.totalorder %s594_s30, %s590_s29 }
  0x12   : > { %p116_p4 = scmp.eq.s32.totalorder %s115_s10, 0  ;;  %p129_p5 = scmp.eq.s32.totalorder %s667_s0, 7 }
  0x13   : > { %p134_p6 = scmp.ne.s32.totalorder %s590_s29, %s586_s28  ;;  %p135_p7 = scmp.eq.s32.totalorder %s405_s7, 7 }
  0x14   : > { %s682_s11 = scalar_select %p116_p4, %s594_s30, %s118_s9  }
  0x15   : > { %p684_p8 = por %p129_p5, %p128_p3  ;;  %p688_p9 = por %p135_p7, %p134_p6 }
  0x16   : > { %p408_p10 = scmp.ge.s32.totalorder %s598_s6, 1  ;;  %p169_p11 = scmp.lt.s32.totalorder %s598_s6, 9 }
  0x18   : > { %p170_p12 = pnand %p408_p10, %p169_p11 }
  0x19   : > { %p194_p13 = scmp.lt.s32.totalorder (!%p170_p12), %s667_s0, 7  ;;  %s696_s14 = sshll.u32 (!%p170_p12), %s667_s0, 3  ;;  %v601_v0 = vmov (!%p170_p12), 0   ;;  %v602_v2 = vmov (!%p170_p12), 0.0   ;;  %v280_v15 = vlaneseq (!%p170_p12)  ;;  %v271_v19 = vld [vmem:[%s809_s2] sm:$0xff] (!%p170_p12) }
  0x1a   : > { %173 = sbr.rel (%p170_p12) target bundleno = 196 (0xc4), region = 36  ;;  %518 = vset.pattern.permute.xlu0 (!%p170_p12), %v601_v0  ;;  %s199_s15 = sld [smem:[#allocation5 + %s696_s14]] (!%p170_p12)  ;;  %v313_v32 = vld [vmem:[%s810_s3] sm:$0xff] (!%p170_p12) }
  0x1b   : > { %s207_s16 = sadd.s32 (!%p170_p12), 1, %s696_s14  ;;  %s216_s19 = sadd.s32 (!%p170_p12), 2, %s696_s14  ;;  %v281_v16 = vshrl.u32 (!%p170_p12), %v280_v15, 7 }
  0x1c   : > { %s701_s18 = sld [smem:[#allocation5 + %s207_s16]] (!%p170_p12)  ;;  %s225_s25 = sadd.s32 (!%p170_p12), 3, %s696_s14 }
  0x1d   : > { %s704_s21 = sld [smem:[#allocation5 + %s216_s19]] (!%p170_p12)  ;;  %s234_s26 = sadd.s32 (!%p170_p12), 4, %s696_s14  ;;  %v282_v17 = vsub.s32 (!%p170_p12), 0, %v281_v16  ;;  %v295_v18 = vsub.s32 (!%p170_p12), 1, %v281_v16  ;;  %v309_v20 = vsub.s32 (!%p170_p12), 2, %v281_v16 }
  0x1e   : > { %s711_s27 = sld [smem:[#allocation5 + %s225_s25]] (!%p170_p12)  ;;  %s243_s25 = sadd.s32 (!%p170_p12), 5, %s696_s14 }
  0x1f   : > { %s713_s7 = sld [smem:[#allocation5 + %s234_s26]] (!%p170_p12)  ;;  %s252_s19 = sadd.s32 (!%p170_p12), 6, %s696_s14  ;;  %v283_v21 = vrot.slane (!%p170_p12), %v271_v19, %v282_v17  ;;  %v296_v22 = vrot.slane (!%p170_p12), %v271_v19, %v295_v18  ;;  %v310_v26 = vrot.slane (!%p170_p12), %v271_v19, %v309_v20 }
  0x20   : > { %p200_p0 = scmp.gt.s32.totalorder (!%p170_p12), %s199_s15, 0  ;;  %p412_p1 = scmp.lt.s32.totalorder (!%p170_p12), %s199_s15, 63 }
  0x21   : > { %s195_s17 = scalar_select %p194_p13, %s667_s0, 7 }
  0x22   : > { %s820_s15 = smov (!%p200_p0, %s199_s15), 0  ;;  %p209_p2 = scmp.gt.s32.totalorder %s701_s18, 0 }
  0x23   : > { %s410_s20 = sshll.u32 %s195_s17, 3  ;;  %p417_p3 = scmp.lt.s32.totalorder %s701_s18, 63 }
  0x24   : > { %s197_s24 = scalar_lea.vmem %s808_s1, %s410_s20  ;;  %s822_s15 = smov (!%p412_p1, %s820_s15), 63 }
  0x25   : > { %v270_v1 = vld [vmem:[%s197_s24] sm:$0xff]  ;;  %s824_s18 = smov (!%p209_p2, %s701_s18), 0  ;;  %s204_s16 = scalar_lea.vmem %s811_s4, %s822_s15 }
  0x26   : > { %vm272_vm0 = vcmp.eq.s32.totalorder %v270_v1, 0  ;;  %vm285_vm1 = vcmp.eq.s32.totalorder %v270_v1, 1  ;;  %vm299_vm2 = vcmp.eq.s32.totalorder %v270_v1, 2  ;;  %p218_p4 = scmp.gt.s32.totalorder %s704_s21, 0  ;;  %v205_v7 = vld [vmem:[%s204_s16] sm:$0x1] }
  0x27   : > { %v452_v3 = vsel %vm272_vm0, 1.0, %v602_v2  ;;  %v453_v4 = vsel %vm285_vm1, 1.0, %v602_v2  ;;  %v454_v6 = vsel %vm299_vm2, 1.0, %v602_v2  ;;  %s826_s18 = smov (!%p417_p3, %s824_s18), 63  ;;  %206 = vst [vmem:[#allocation2] sm:$0x1] %v205_v7 }
  0x28   : > { %v519_v5 = vpack.i.bf16 %v453_v4, %v452_v3  ;;  %s219_s17 = scalar_select %p218_p4, %s704_s21, 0 }
  0x29   : > { %s213_s22 = scalar_lea.vmem %s811_s4, %s826_s18  ;;  %p422_p5 = scmp.lt.s32.totalorder %s704_s21, 63 }
  0x2a   : > { %520 = vperm.xlu0 %518, %v519_v5   ;;  %v214_v8 = vld [vmem:[%s213_s22] sm:$0x1]  ;;  %p227_p6 = scmp.gt.s32.totalorder %s711_s27, 0  ;;  %p236_p7 = scmp.gt.s32.totalorder %s713_s7, 0 }
  0x2b   : > { %215 = vst [vmem:[#allocation2 + $0x1] sm:$0x1] %v214_v8  ;;  %s828_s17 = smov (!%p422_p5, %s219_s17), 63  ;;  %p427_p10 = scmp.lt.s32.totalorder %s711_s27, 63 }
  0x2c   : > { %s222_s24 = scalar_lea.vmem %s811_s4, %s828_s17  ;;  %p432_p11 = scmp.lt.s32.totalorder %s713_s7, 63 }
  0x2d   : > { %v223_v9 = vld [vmem:[%s222_s24] sm:$0x1]  ;;  %s830_s27 = smov (!%p227_p6, %s711_s27), 0  ;;  %s832_s7 = smov (!%p236_p7, %s713_s7), 0 }
  0x2e   : > { %304 = vperm.xlu0 %518, %v454_v6   ;;  %224 = vst [vmem:[#allocation2 + $0x2] sm:$0x1] %v223_v9  ;;  %s834_s27 = smov (!%p427_p10, %s830_s27), 63  ;;  %s836_s7 = smov (!%p432_p11, %s832_s7), 63 }
  0x2f   : > { %s231_s26 = scalar_lea.vmem %s811_s4, %s834_s27  ;;  %s244_s9 = sld [smem:[#allocation5 + %s243_s25]] }
  0x30   : > { %v232_v10 = vld [vmem:[%s231_s26] sm:$0x1]  ;;  %s240_s17 = scalar_lea.vmem %s811_s4, %s836_s7  ;;  %s253_s20 = sld [smem:[#allocation5 + %s252_s19]] }
  0x31   : > { %233 = vst [vmem:[#allocation2 + $0x3] sm:$0x1] %v232_v10  ;;  %v241_v11 = vld [vmem:[%s240_s17] sm:$0x1]  ;;  %s261_s22 = sadd.s32 7, %s696_s14  ;;  %s191_s17 = sand.u32 1, %s590_s29  }
  0x32   : > { %242 = vst [vmem:[#allocation2 + $0x4] sm:$0x1] %v241_v11  ;;  %s262_s15 = sld [smem:[#allocation5 + %s261_s22]]  ;;  %s409_s19 = sshll.u32 %s191_s17, 3 }
  0x33   : > { %s193_s27 = scalar_lea.vmem [#allocation6], %s409_s19  ;;  %s319_s14 = scalar_lea.sflag [#allocation7], %s191_s17 }
  0x34   : > { %s332_s23 = sshll.u32 %s193_s27, 4  ;;  %s767_s23 = int_to_ptr.vmem [resolvable:$true] %s332_s23 }
  0x35   : > { %p245_p12 = scmp.gt.s32.totalorder %s244_s9, 0  ;;  %p437_p13 = scmp.lt.s32.totalorder %s244_s9, 63 }
  0x36   : > { %p254_p0 = scmp.gt.s32.totalorder %s253_s20, 0  ;;  %p442_p1 = scmp.lt.s32.totalorder %s253_s20, 63 }
  0x37   : > { %s838_s9 = smov (!%p245_p12, %s244_s9), 0 }
  0x38   : > { %s840_s9 = smov (!%p437_p13, %s838_s9), 63  ;;  %s842_s20 = smov (!%p254_p0, %s253_s20), 0 }
  0x39   : > { %s249_s24 = scalar_lea.vmem %s811_s4, %s840_s9  ;;  %p263_p2 = scmp.gt.s32.totalorder %s262_s15, 0 }
  0x3a   : > { %v250_v12 = vld [vmem:[%s249_s24] sm:$0x1]  ;;  %s844_s20 = smov (!%p442_p1, %s842_s20), 63  ;;  %p447_p3 = scmp.lt.s32.totalorder %s262_s15, 63 }
  0x3b   : > { %251 = vst [vmem:[#allocation2 + $0x5] sm:$0x1] %v250_v12  ;;  %s264_s7 = scalar_select %p263_p2, %s262_s15, 0 }
  0x3c   : > { %s258_s18 = scalar_lea.vmem %s811_s4, %s844_s20  ;;  %s456_s15 = sshll.u32 %s667_s0, 7 }
  0x3d   : > { %v259_v13 = vld [vmem:[%s258_s18] sm:$0x1]  ;;  %s846_s7 = smov (!%p447_p3, %s264_s7), 63  ;;  %s765_s25 = scalar_lea.hbm %s812_s5, %s456_s15 }
  0x3e   : > { %260 = vst [vmem:[#allocation2 + $0x6] sm:$0x1] %v259_v13  ;;  %s267_s10 = scalar_lea.vmem %s811_s4, %s846_s7  ;;  %s534_s18 = scalar_lea.vmem %s767_s23, 128 }
  0x3f   : > { %v268_v14 = vld [vmem:[%s267_s10] sm:$0x1]  ;;  %p535_p4 = scmp.ne.s32.totalorder %s767_s23, %s534_s18  ;;  %s603_s0 = smov [#allocation6]  }
  0x40   : > { %269 = vst [vmem:[#allocation2 + $0x7] sm:$0x1] %v268_v14  ;;  %s538_s21 = sshll.u32 %s603_s0, 4  ;;  %s539_s21 = int_to_ptr.vmem [resolvable:$false] %s538_s21 }
  0x41   : > { %p536_p5 = pnand %p535_p4, %p684_p8  ;;  %s540_s26 = scalar_lea.vmem %s539_s21, 256 }
  0x42   : > { %p541_p7 = scmp.lt.s32.totalorder %s767_s23, %s539_s21  ;;  %p542_p10 = scmp.lt.s32.totalorder %s540_s26, %s534_s18 }
  0x43   : > { %p537_p6 = pneg %p536_p5 }
  0x44   : > { %p543_p11 = por %p542_p10, %p541_p7 }
  0x46   : > { %p544_p12 = pnand %p543_p11, %p537_p6 }
  0x47   : > { %v315_v34 = vld [vmem:[#allocation2] sm:$0xff] }
  0xa9   : > { %v521_v23 = vpop.permute.xlu0 %520 }
  0xaa   : > { %v523_v24 = vunpack.i.h.bf16 %v521_v23  ;;  %v522_v25 = vunpack.i.l.bf16 %v521_v23 }
  0xac   : > { %v297_v27 = vmul.f32 %v523_v24, %v296_v22  ;;  %v284_v28 = vmul.f32 %v522_v25, %v283_v21 }
  0xad   : > { %v305_v29 = vpop.permute.xlu0 %304 }
  0xae   : > { %v298_v30 = vadd.f32 %v297_v27, %v284_v28  ;;  %v311_v31 = vmul.f32 %v310_v26, %v305_v29 }
  0xb0   : > { %v312_v33 = vadd.f32 %v311_v31, %v298_v30 }
  0xb2   : > { %v314_v35 = vadd.f32 %v313_v32, %v312_v33 }
  0xb4   : > { %v316_v36 = vadd.f32 %v315_v34, %v314_v35 }
  0xb6   : > { %317 = vst [vmem:[%s193_s27] sm:$0xff] %v316_v36 }
  0xb7   : > { %547 = shalt.err (!%p544_p12)
}
  0xb8   : > { %s548_s10 = scalar_lea.hbm %s765_s25, 128  ;;  %s552_s17 = scalar_lea.hbm %s812_s5, 1024 }
  0xb9   : > { %p549_p13 = scmp.ne.s32.totalorder %s765_s25, %s548_s10  ;;  %p553_p2 = scmp.lt.u32.totalorder %s765_s25, %s812_s5 }
  0xba   : > { %p554_p3 = scmp.lt.u32.totalorder %s552_s17, %s548_s10  ;;  %p556_p5 = scmp.lt.u32.totalorder %s548_s10, %s765_s25 }
  0xbb   : > { %p550_p0 = pnand %p549_p13, %p684_p8 }
  0xbc   : > { %p555_p4 = por %p554_p3, %p553_p2 }
  0xbd   : > { %p551_p1 = pneg %p550_p0 }
  0xbe   : > { %p557_p6 = por %p556_p5, %p555_p4 }
  0xc0   : > { %p558_p7 = pnand %p557_p6, %p551_p1 }
  0xc2   : > { %561 = shalt.err (!%p558_p7)
}
  0xc3   : > { %476 = dma.vmem_to_hbm [thread:$0]  (%p684_p8), %s767_s23, 128, %s765_s25, %s319_s14  }
  0xc4 PF: > { %p482_p10 = scmp.ge.s32.totalorder %s598_s6, 2  ;;  %s344_s22 = sand.u32 1, %s586_s28  }
  0xc5   : > { %s345_s15 = scalar_lea.sflag [#allocation7], %s344_s22 }
  0xc6   : > { %p479_p11 = pnand %p482_p10, %p688_p9 }
  0xc8   : > { %581 = dma.done.wait (!%p479_p11), %s345_s15, 128  }
  0xc9   : > { %583 = vsyncadd (!%p479_p11), %s345_s15, 4294967168  ;;  %p19_p12 = scmp.ge.s32.totalorder %s671_s8, 10   ;;  %s815_s28 = smov %s590_s29 }
  0xca   : > { %s816_s29 = smov %s594_s30  ;;  %s817_s30 = smov %s682_s11 }
  0xcb   : > { %s818_s6 = smov %s671_s8  ;;  %21 = sbr.rel (!%p19_p12) target bundleno = 15 (0xf), region = 79 }
  0xd2   :  { %350 = vsyncpa [#allocation7], 1 }
  0xd3   :  { %352 = vsyncpa [#allocation7 + $0x1], 1 }
  0xd4   :  { %353 = vsyncmov [#allocation3] }
  0xd7   :  { %s354_s6 = vpop.sfrf %353 }
  0xd8   :  { %p459_p8 = scmp.ne.s32.totalorder %s354_s6, 0 }
  0xda   :  { %358 = shalt.err (%p459_p8)  }

</bundles_post_ra>
